<compile_context>
chip_gen: v6e
topology: v6e:2x2x1
jax: 0.10.0
libtpu: 0.0.40
codegen_flags: <defaults>
</compile_context>

<pallas_src>
import math
import numpy as np
import jax
import jax.numpy as jnp
from jax import lax
from jax.experimental import pallas as pl
from jax.experimental.pallas import tpu as pltpu

_LANE = 128  # TPU lane width


# ----------------------------------------------------------------------------
# Filter construction (deterministic glue, mirrors the PyTorch __init__/forward)
# ----------------------------------------------------------------------------
def _to_mel(hz):
    return 2595.0 * np.log10(1.0 + hz / 700.0)


def _to_hz(mel):
    return 700.0 * (10.0 ** (mel / 2595.0) - 1.0)


def make_sinc_filters(out_channels, kernel_size, sample_rate=16000):
    if kernel_size % 2 == 0:
        kernel_size = kernel_size + 1
    NFFT = 512
    f = int(sample_rate / 2) * np.linspace(0, 1, int(NFFT / 2) + 1)
    fmel = _to_mel(f)
    filbandwidthsmel = np.linspace(fmel.min(), fmel.max(), out_channels + 1)
    mel = _to_hz(filbandwidthsmel)
    hsupp = np.arange(-(kernel_size - 1) / 2, (kernel_size - 1) / 2 + 1)
    band_pass = np.zeros((out_channels, kernel_size), dtype=np.float64)
    ham = np.hamming(kernel_size)
    for i in range(out_channels):
        fmin, fmax = mel[i], mel[i + 1]
        hHigh = (2 * fmax / sample_rate) * np.sinc(2 * fmax * hsupp / sample_rate)
        hLow = (2 * fmin / sample_rate) * np.sinc(2 * fmin * hsupp / sample_rate)
        band_pass[i, :] = ham * (hHigh - hLow)
    return jnp.asarray(band_pass, dtype=jnp.float32), kernel_size


def make_toeplitz_weights(filters, dtype=jnp.float32):
    """(C, K) sinc filters -> (256, C*128) banded Toeplitz matrix M with
       M[m, c*128 + l] = w[c, m - l]  if 0 <= m - l < K else 0
    so that  out[c, t0 + l] = sum_m x[t0 + m] * M[m, c*128 + l]
    reproduces the valid cross-correlation (== F.conv1d) for any 128-column
    output block starting at t0, as a single K=256 contraction."""
    C, K = filters.shape
    # TODO(synk): K > 129 needs extra 128-row bands of M (more halo blocks).
    assert K <= _LANE + 1, "kernel_size too large for a single 128-lane halo"
    m_idx = jnp.arange(2 * _LANE)[:, None]        # (256, 1)
    l_idx = jnp.arange(_LANE)[None, :]            # (1, 128)
    k = m_idx - l_idx                             # (256, 128)
    valid = (k >= 0) & (k < K)
    kc = jnp.clip(k, 0, K - 1)
    band = jnp.where(valid[None, :, :], filters[:, kc], 0.0)   # (C, 256, 128)
    M = jnp.transpose(band, (1, 0, 2)).reshape(2 * _LANE, C * _LANE)
    return M.astype(dtype)


# ----------------------------------------------------------------------------
# Pallas kernel: one lane/sublane-dense MXU matmul per grid step.
#   x_ref: (tpb*B, 256)      time-block-major input slab (128 block + 128 halo)
#   m_ref: (256, C*128)      banded Toeplitz filter matrix (VMEM-resident;
#                            constant index_map so it is never re-fetched)
#   o_ref: (tpb*B, C*128)    lane-dense output block
# ----------------------------------------------------------------------------
def _sinc_conv_kernel(x_ref, m_ref, o_ref):
    o_ref[...] = jnp.dot(x_ref[...], m_ref[...],
                         preferred_element_type=jnp.float32).astype(o_ref.dtype)


def _choose_tpb(n128, B, C, compute_bytes, out_bytes, *,
                target_out_block_bytes=2 << 20, vmem_budget_bytes=20 << 20):
    """Pick 128-col blocks per grid step: ~2 MiB of output per step, fits the
    double-buffered VMEM budget, keeps n_tiles >= 2 when possible (v7x dual
    TensorCore), and keeps tpb*B a multiple of 8 (sublane-aligned blocks)."""
    tpb_min = 8 // math.gcd(B, 8)                  # smallest tpb with tpb*B % 8 == 0
    per_block_out = B * C * _LANE * out_bytes      # one 128-col block, all batches
    per_block_in = B * 2 * _LANE * compute_bytes
    m_bytes = 2 * _LANE * C * _LANE * compute_bytes
    tpb = max(tpb_min, target_out_block_bytes // per_block_out)
    # double-buffered in/out blocks + double-buffered (constant) Toeplitz matrix
    while tpb > tpb_min and (2 * tpb * (per_block_in + per_block_out)
                             + 2 * m_bytes > vmem_budget_bytes):
        tpb = max(tpb_min, tpb // 2)
    if tpb >= n128:
        tpb = -(-n128 // 2) if n128 > 2 * tpb_min else n128
    return max(tpb_min, -(-int(tpb) // tpb_min) * tpb_min)


def sinc_conv_forward(x, filters, *, compute_dtype=jnp.bfloat16,
                      out_dtype=jnp.float32, block_cols=None,
                      return_slab=False):
    """x: (B, 1, L), filters: (C, K) -> (B, C, L - K + 1) in out_dtype.

    compute_dtype: dtype of x / Toeplitz matrix fed to the MXU (bf16 default,
                   f32 accumulation either way).
    block_cols:    output columns per grid step (multiple of 128); None ->
                   auto-derived (~2 MiB output per step, 20 MiB VMEM budget).
    return_slab:   skip the wrapper NCW transpose and return the kernel's
                   lane-dense (n_blocks, B, C, 128) slab plus L_out instead
                   (avoids one full extra pass over the output).
    """
    B, in_ch, L = x.shape
    assert in_ch == 1, "SincConvBaseline only supports one input channel"
    C, K = filters.shape
    assert K <= _LANE + 1, "kernel_size too large for a single 128-lane halo"
    L_out = L - K + 1
    assert L_out >= 1

    compute_bytes = np.dtype(compute_dtype).itemsize
    out_bytes = np.dtype(out_dtype).itemsize

    n128 = pl.cdiv(L_out, _LANE)                  # number of 128-col output blocks
    if block_cols is None:
        tpb = _choose_tpb(n128, B, C, compute_bytes, out_bytes)
    else:
        tpb_min = 8 // math.gcd(B, 8)
        tpb = max(tpb_min, -(-(block_cols // _LANE) // tpb_min) * tpb_min)
    n_tiles = pl.cdiv(n128, tpb)
    n_blocks = n_tiles * tpb                      # padded 128-col block count
    n_rows = n_blocks * B                         # total MXU LHS rows
    rows_per_tile = tpb * B

    # ---- wrapper-side layout plumbing (input is ~C x smaller than output) ---
    # Slab row (blk*B + b) holds x[b, blk*128 : blk*128 + 256]: the block's 128
    # "lo" samples plus the 128-sample halo, so the whole valid cross-
    # correlation of a 128-column output block is one K=256 contraction.
    Lx = (n_blocks + 1) * _LANE
    x2d = jnp.pad(x.reshape(B, L).astype(compute_dtype), ((0, 0), (0, Lx - L)))
    x_lo = x2d[:, :n_blocks * _LANE].reshape(B, n_blocks, _LANE)
    x_hi = x2d[:, _LANE:].reshape(B, n_blocks, _LANE)
    x256 = jnp.concatenate([x_lo, x_hi], axis=-1)            # (B, n_blocks, 256)
    x256 = jnp.transpose(x256, (1, 0, 2)).reshape(n_rows, 2 * _LANE)

    M = make_toeplitz_weights(filters, dtype=compute_dtype)   # (256, C*128)

    flops = 2 * n_rows * (2 * _LANE) * (C * _LANE)
    bytes_accessed = (n_rows * 2 * _LANE * compute_bytes
                      + 2 * _LANE * C * _LANE * compute_bytes
                      + n_rows * C * _LANE * out_bytes)

    out_slab = pl.pallas_call(
        _sinc_conv_kernel,
        out_shape=jax.ShapeDtypeStruct((n_rows, C * _LANE), out_dtype),
        grid_spec=pltpu.PrefetchScalarGridSpec(
            num_scalar_prefetch=0,
            grid=(n_tiles,),
            in_specs=[
                # time-block-major input slab: rows_per_tile fresh rows per step
                pl.BlockSpec((rows_per_tile, 2 * _LANE), lambda j: (j, 0)),
                # Toeplitz filter matrix: constant index_map -> stays VMEM-resident
                pl.BlockSpec((2 * _LANE, C * _LANE), lambda j: (0, 0)),
            ],
            out_specs=pl.BlockSpec((rows_per_tile, C * _LANE), lambda j: (j, 0)),
        ),
        compiler_params=pltpu.CompilerParams(
            dimension_semantics=("parallel",),
            vmem_limit_bytes=32 * 1024 * 1024,
        ),
        cost_estimate=pl.CostEstimate(flops=flops, transcendentals=0,
                                      bytes_accessed=bytes_accessed),
    )(x256, M)

    slab = out_slab.reshape(n_blocks, B, C, _LANE)
    if return_slab:
        # Lane-dense layout for fused downstream consumers; time positions
        # >= L_out (in block-major order) are zero padding.
        return slab, L_out
    # NCW layout for parity with F.conv1d.  This costs one extra pass over the
    # (dominant) output stream; prefer return_slab=True or bf16 out_dtype when
    # the downstream graph can absorb the layout.
    out = jnp.transpose(slab, (1, 2, 0, 3)).reshape(B, C, n_blocks * _LANE)
    return out[:, :, :L_out]


# ----------------------------------------------------------------------------
# Reference (plain JAX) for correctness check
# ----------------------------------------------------------------------------
def sinc_conv_reference(x, filters):
    w = filters[:, None, :]  # (C_out, C_in=1, K)
    return lax.conv_general_dilated(
        x, w, window_strides=(1,), padding="VALID",
        dimension_numbers=("NCH", "OIH", "NCH"),
        precision=lax.Precision.HIGHEST,
    )


if __name__ == "__main__":
    out_channels = 8
    kernel_size = 16          # even -> module bumps it to 17
    sample_rate = 16000
    B, L = 2, 2000            # small; exercises multi-tile grid + tail cropping

    filters, K = make_sinc_filters(out_channels, kernel_size, sample_rate)

    key = jax.random.PRNGKey(0)
    x = jax.random.normal(key, (B, 1, L), dtype=jnp.float32)

    ref = jax.block_until_ready(sinc_conv_reference(x, filters))

    # Default path: bf16-fed MXU, f32 accumulation / f32 output.
    out = jax.block_until_ready(sinc_conv_forward(x, filters))
    assert out.shape == (B, out_channels, L - K + 1)
    np.testing.assert_allclose(np.asarray(out), np.asarray(ref),
                               rtol=2e-2, atol=2e-2)

    # f32-fed MXU path — tight tolerance.
    out_f32 = jax.block_until_ready(
        sinc_conv_forward(x, filters, compute_dtype=jnp.float32))
    np.testing.assert_allclose(np.asarray(out_f32), np.asarray(ref),
                               rtol=1e-4, atol=1e-4)

    print("KERNEL_OK")
</pallas_src>

<mosaic_0001>
module attributes {stable_mosaic.version = 11 : i64} {
  func.func @_sinc_conv_kernel(%arg0: i32, %arg1: memref<16x256xbf16, #tpu.memory_space<vmem>>, %arg2: memref<256x1024xbf16, #tpu.memory_space<vmem>>, %arg3: memref<16x1024xf32, #tpu.memory_space<vmem>>) attributes {dimension_semantics = [#tpu.dimension_semantics<parallel>], iteration_bounds = array<i64: 2>, scalar_prefetch = 0 : i64, scratch_operands = 0 : i64, tpu.core_type = #tpu.core_type<tc>, window_params = [{transform_indices = @transform_0, window_bounds = array<i64: 16, 256>}, {pipeline_mode = #tpu.pipeline_mode<synchronous>, transform_indices = @transform_1, window_bounds = array<i64: 256, 1024>}, {transform_indices = @transform_2, window_bounds = array<i64: 16, 1024>}]} {
    %c0 = arith.constant 0 : index
    %c0_0 = arith.constant 0 : index
    %0 = vector.load %arg1[%c0, %c0_0] : memref<16x256xbf16, #tpu.memory_space<vmem>>, vector<16x256xbf16>
    %c0_1 = arith.constant 0 : index
    %c0_2 = arith.constant 0 : index
    %1 = vector.load %arg2[%c0_1, %c0_2] : memref<256x1024xbf16, #tpu.memory_space<vmem>>, vector<256x1024xbf16>
    %cst = arith.constant dense<0.000000e+00> : vector<16x1024xf32>
    %2 = tpu.matmul %0, %1, %cst {dimension_numbers = #tpu.dot_dimension_numbers<[1], [0], [0], [1], [0, 0, 1, 1], [], []>} : vector<16x256xbf16>, vector<256x1024xbf16>, vector<16x1024xf32> -> vector<16x1024xf32>
    %c0_3 = arith.constant 0 : index
    %c0_4 = arith.constant 0 : index
    %3 = vector.load %arg3[%c0_3, %c0_4] : memref<16x1024xf32, #tpu.memory_space<vmem>>, vector<16x1024xf32>
    tpu.vector_store %arg3[%c0_3, %c0_4], %2 {strides = array<i32>} : memref<16x1024xf32, #tpu.memory_space<vmem>>, vector<16x1024xf32>,
    return
  }
  func.func @transform_0(%arg0: i32) -> (i32, i32) {
    %c0_i32 = arith.constant 0 : i32
    %c0_i32_0 = arith.constant 0 : i32
    return %arg0, %c0_i32 : i32, i32
  }
  func.func @transform_1(%arg0: i32) -> (i32, i32) {
    %c0_i32 = arith.constant 0 : i32
    %c0_i32_0 = arith.constant 0 : i32
    %c0_i32_1 = arith.constant 0 : i32
    return %c0_i32, %c0_i32_0 : i32, i32
  }
  func.func @transform_2(%arg0: i32) -> (i32, i32) {
    %c0_i32 = arith.constant 0 : i32
    %c0_i32_0 = arith.constant 0 : i32
    return %arg0, %c0_i32 : i32, i32
  }
}

</mosaic_0001>

<bundles_post_ra>
// kernel: tpu_custom_call.1
= control target key start
LH: loop header
LB: loop body
LE: loop exit
PB: predicated region body
PF: predicated region fallthrough
CT: control target
= control target key end

     0   :  { %7 = vsyncpa [#allocation3], 0  ;;  %s1825_s0 = inlined_call_operand.hbm [shape: bf16[32,256], index: 0, kind: input, shape index: {}]   ;;  %s1826_s1 = inlined_call_operand.hbm [shape: bf16[256,1024], index: 1, kind: input, shape index: {}]   ;;  %s1827_s2 = inlined_call_operand.hbm [shape: f32[32,1024], index: 2, kind: output, shape index: {}]  }
   0x1   :  { %9 = vsyncpa [#allocation3 + $0x1], 0 }
   0x2   :  { %10 = vsyncpa [#allocation6], 0 }
   0x3   :  { %11 = vsyncpa [#allocation4], 0 }
   0x4   :  { %13 = vsyncpa [#allocation4 + $0x1], 0  ;;  %s1612_s9 = smov 0   ;;  %s1614_s10 = smov 0  }
   0x5   :  { %s1616_s11 = smov 0   ;;  %s1618_s12 = smov 0  }
   0x6 LB: > { %s1633_s13 = sadd.s32 4294967295, %s1586_s12   ;;  %s1246_s14 = sadd.s32 4294967294, %s1586_s12   ;;  %s1586_s12 = sphi %s1618_s12, %s1849_s12   ;;  %s1582_s11 = sphi %s1616_s11, %s1848_s11   ;;  %s1578_s10 = sphi %s1614_s10, %s1847_s10   ;;  %s1574_s9 = sphi %s1612_s9, %s1846_s9  }
   0x7   : > { %p39_p0 = scmp.ne.s32.totalorder %s1578_s10, %s1574_s9  ;;  %p1828_p1 = scmp.eq.s32.totalorder %s1633_s13, 0 }
   0x8   : > { %p90_p3 = scmp.eq.s32.totalorder %s1246_s14, 1  ;;  %p1247_p5 = scmp.ge.s32.totalorder %s1586_s12, 1 }
   0x9   : > { %p1642_p4 = por %p1828_p1, %p39_p0  ;;  %p97_p7 = scmp.lt.s32.totalorder %s1586_s12, 3 }
   0xa   : > { %p1647_p6 = por %p90_p3, %p39_p0  ;;  %s1588_s18 = smov [#allocation5]  }
   0xb   : > { %s1832_s15 = scalar_select %p1642_p4, 1, 0 }
   0xc   : > { %s1833_s16 = scalar_select %p1647_p6, 1, 0 }
   0xd   : > { %p1652_p8 = pnand %p1247_p5, %p97_p7  ;;  %s109_s19 = sshll.u32 %s1588_s18, 4  ;;  %s110_s19 = int_to_ptr.vmem [resolvable:$true] %s109_s19 }
   0xe   : > { %s1666_s21 = sadd.s32 1, %s1586_s12   ;;  %s26_s22 = sadd.s32 1, %s1582_s11 }
   0xf   : > { %s1834_s17 = scalar_select %p1652_p8, 1, 0 }
  0x10   : > { %p1406_p9 = pneg %p1652_p8  ;;  %s23_s23 = ssub.s32 %s1586_s12, %s1666_s21 }
  0x11   : > { %s1475_s24 = scalar_lea.vmem %s110_s19, 16384  ;;  %p1483_p5 = scmp.lt.s32.totalorder %s110_s19, %s110_s19 }
  0x12   : > { %p1661_p11 = pnand %p1406_p9, %p1828_p1  ;;  %p1476_p13 = scmp.ne.s32.totalorder %s110_s19, %s1475_s24 }
  0x13   : > { %p1484_p7 = scmp.lt.s32.totalorder %s1475_s24, %s1475_s24 }
  0x14   : > { %p1466_p12 = pneg %p1661_p11 }
  0x15   : > { %p1485_p10 = por %p1484_p7, %p1483_p5 }
  0x16   : > { %p1478_p0 = pnand %p1476_p13, %p1466_p12 }
  0x18   : > { %p1479_p3 = pneg %p1478_p0 }
  0x1a   : > { %p1486_p2 = pnand %p1485_p10, %p1479_p3 }
  0x1c   : > { %1489 = shalt.err (!%p1486_p2)
}
  0x1d   : > { %s1589_s25 = smov 512   ;;  %s1590_s26 = smov 32  }
  0x1e   : > { %1409 = dma.hbm_to_vmem [thread:$0]  (!%p1661_p11), %s1826_s1, 16384, %s110_s19, [#allocation6], %s1589_s25, %s1589_s25, %s1590_s26  }
  0x1f   : > { %p24_p9 = scmp.eq.s32.totalorder %s23_s23, 0  ;;  %p33_p12 = scmp.ne.s32.totalorder %s1582_s11, %s1578_s10 }
  0x20   : > { %p34_p10 = scmp.eq.s32.totalorder %s1586_s12, 0  ;;  %p1419_p2 = scmp.lt.s32.totalorder %s1586_s12, 2 }
  0x21   : > { %s1683_s29 = scalar_select %p24_p9, %s1582_s11, %s26_s22  }
  0x22   : > { %p35_p13 = por %p34_p10, %p33_p12  ;;  %p1836_p0 = scmp.eq.s32.totalorder %s1633_s13, 1 }
  0x23   : > { %s123_s3 = sand.u32 1, %s1582_s11   ;;  %s1395_s4 = sshll.u32 %s1586_s12, 8 }
  0x24   : > { %p1687_p3 = por %p1836_p0, %p33_p12  ;;  %s1250_s5 = sshll.u32 %s123_s3, 4 }
  0x25   : > { %s1696_s8 = scalar_lea.hbm %s1825_s0, %s1395_s4  ;;  %s127_s14 = scalar_lea.vmem [#allocation2], %s1250_s5 }
  0x26   : > { %s1837_s30 = scalar_select %p1687_p3, 1, 0 }
  0x27   : > { %s135_s18 = sshll.u32 %s127_s14, 4  ;;  %p1698_p11 = pnand %p1419_p2, %p35_p13  ;;  %s1702_s18 = int_to_ptr.vmem [resolvable:$true] %s135_s18 }
  0x28   : > { %s1704_s20 = scalar_lea.sflag [#allocation3], %s123_s3  ;;  %s1490_s22 = scalar_lea.hbm %s1696_s8, 256 }
  0x29   : > { %p1491_p5 = scmp.ne.s32.totalorder %s1696_s8, %s1490_s22  ;;  %p1492_p7 = pneg %p1698_p11 }
  0x2a   : > { %s1495_s25 = scalar_lea.hbm %s1825_s0, 512  ;;  %p1496_p10 = scmp.lt.s32.totalorder %s1696_s8, %s1825_s0 }
  0x2b   : > { %p1493_p9 = pnand %p1492_p7, %p1491_p5  ;;  %p1497_p2 = scmp.lt.s32.totalorder %s1495_s25, %s1490_s22 }
  0x2d   : > { %p1494_p12 = pneg %p1493_p9  ;;  %p1498_p13 = por %p1497_p2, %p1496_p10 }
  0x2f   : > { %p1499_p0 = pnand %p1498_p13, %p1494_p12 }
  0x31   : > { %1502 = shalt.err (!%p1499_p0)
}
  0x32   : > { %s1503_s28 = scalar_lea.vmem %s1702_s18, 256  ;;  %s1591_s3 = smov [#allocation2]  }
  0x33   : > { %p1504_p1 = scmp.ne.s32.totalorder %s1702_s18, %s1503_s28  ;;  %s1508_s4 = sshll.u32 %s1591_s3, 4  ;;  %s1509_s4 = int_to_ptr.vmem [resolvable:$false] %s1508_s4 }
  0x34   : > { %s1510_s5 = scalar_lea.vmem %s1509_s4, 512  ;;  %p1511_p9 = scmp.lt.s32.totalorder %s1702_s18, %s1509_s4 }
  0x35   : > { %p1506_p6 = pnand %p1504_p1, %p1492_p7  ;;  %p1512_p3 = scmp.lt.s32.totalorder %s1510_s5, %s1503_s28 }
  0x37   : > { %p1507_p5 = pneg %p1506_p6  ;;  %p1513_p4 = por %p1512_p3, %p1511_p9 }
  0x39   : > { %p1514_p8 = pnand %p1513_p4, %p1507_p5 }
  0x3b   : > { %1517 = shalt.err (!%p1514_p8)
}
  0x3c   : > { %s1592_s6 = smov 128   ;;  %s1593_s7 = smov 8  }
  0x3d   : > { %1413 = dma.hbm_to_vmem [thread:$0]  (!%p1698_p11), %s1696_s8, 256, %s1702_s18, %s1704_s20, %s1592_s6, %s1592_s6, %s1593_s7  }
  0x3e   : > { %p1839_p1 = scmp.ne.s32.totalorder %s1834_s17, 0 }
  0x3f   : > { %s1728_s14 = sand.u32 (!%p1839_p1), 1, %s1578_s10   ;;  %p1840_p4 = scmp.ne.s32.totalorder (!%p1839_p1), %s1832_s15, 0 }
  0x40   : > { %147 = sbr.rel (%p1839_p1) target bundleno = 418 (0x1a2), region = 28  ;;  %s1255_s22 = sshll.u32 (!%p1839_p1), %s1728_s14, 4 }
  0x41   : > { %s150_s23 = scalar_lea.sflag (!%p1839_p1), [#allocation3], %s1728_s14  ;;  %s1732_s24 = scalar_lea.vmem (!%p1839_p1), [#allocation2], %s1255_s22 }
  0x45   : > { %1561 = dma.done.wait (%p1840_p4), %s150_s23, 256  }
  0x46   : > { %1563 = vsyncadd (%p1840_p4), %s150_s23, 4294967040  ;;  %p1841_p6 = scmp.eq.s32.totalorder %s1633_s13, 0 }
  0x48   : > { %1565 = dma.done.wait (%p1841_p6), [#allocation6], 16384   ;;  %p1842_p8 = pmov %p1841_p6 }
  0x49   : > { %v238_v0 = vld [vmem:[#allocation5 + $0x1c0] sm:$0xff]  ;;  %v239_v2 = vld [vmem:[#allocation5 + $0x1c8] sm:$0xff]  ;;  %s1257_s15 = sshll.u32 %s1728_s14, 7  ;;  %s1397_s8 = sshll.u32 %s1633_s13, 11 }
  0x4a   : > { %1567 = vsyncadd (%p1842_p8), [#allocation6], 4294950912  ;;  %v242_v1 = vld [vmem:[#allocation5 + $0x1e0] sm:$0xff]  ;;  %v243_v4 = vld [vmem:[#allocation5 + $0x1e8] sm:$0xff]  ;;  %s1757_s17 = scalar_lea.vmem [#allocation7], %s1257_s15  ;;  %s1777_s25 = scalar_lea.hbm %s1827_s2, %s1397_s8 }
  0x4b   : > { %v1317_v3 = vcombine.high %v238_v0, %v242_v1  ;;  %v1316_v5 = vcombine.low %v238_v0, %v242_v1  ;;  %v230_v6 = vld [vmem:[#allocation5 + $0x180] sm:$0xff]  ;;  %v1319_v8 = vcombine.high %v239_v2, %v243_v4  ;;  %v1318_v9 = vcombine.low %v239_v2, %v243_v4  ;;  %v231_v11 = vld [vmem:[#allocation5 + $0x188] sm:$0xff]  ;;  %s1163_s18 = sshll.u32 %s1757_s17, 4  ;;  %s1149_s13 = scalar_lea.sflag [#allocation4], %s1728_s14  ;;  %s1779_s18 = int_to_ptr.vmem [resolvable:$true] %s1163_s18 }
  0x4c   : > { %v234_v7 = vld [vmem:[#allocation5 + $0x1a0] sm:$0xff]  ;;  %v235_v12 = vld [vmem:[#allocation5 + $0x1a8] sm:$0xff]  ;;  %s1518_s26 = scalar_lea.vmem %s1779_s18, 2048  ;;  %p1843_p11 = scmp.ne.s32.totalorder %s1837_s30, 0 }
  0x4d   : > { %v1309_v10 = vcombine.high %v230_v6, %v234_v7  ;;  %v222_v13 = vld [vmem:[#allocation5 + $0x140] sm:$0xff]  ;;  %960 = vmatprep.subr.bf16.mxu0 %v1317_v3  ;;  %v1311_v14 = vcombine.high %v231_v11, %v235_v12  ;;  %v223_v16 = vld [vmem:[#allocation5 + $0x148] sm:$0xff]  ;;  %1003 = vmatprep.subr.bf16.mxu1 %v1319_v8  ;;  %v1308_v18 = vcombine.low %v230_v6, %v234_v7  ;;  %p1519_p3 = scmp.ne.s32.totalorder %s1779_s18, %s1518_s26  ;;  %s1594_s27 = smov [#allocation7]  }
  0x4e   : > { %v226_v15 = vld [vmem:[#allocation5 + $0x160] sm:$0xff]  ;;  %v227_v17 = vld [vmem:[#allocation5 + $0x168] sm:$0xff]  ;;  %961 = vmatpush1.bf16.msra.mxu0 %v1316_v5  ;;  %1004 = vmatpush1.bf16.msra.mxu1 %v1318_v9  ;;  %v1310_v19 = vcombine.low %v231_v11, %v235_v12  ;;  %s1522_s28 = sshll.u32 %s1594_s27, 4  ;;  %s1523_s28 = int_to_ptr.vmem [resolvable:$false] %s1522_s28 }
  0x4f   : > { %962 = vmatprep.subr.bf16.mxu0 %v1309_v10  ;;  %v1301_v20 = vcombine.high %v222_v13, %v226_v15  ;;  %1005 = vmatprep.subr.bf16.mxu1 %v1311_v14  ;;  %v1303_v21 = vcombine.high %v223_v16, %v227_v17  ;;  %v214_v22 = vld [vmem:[#allocation5 + $0x100] sm:$0xff]  ;;  %v215_v24 = vld [vmem:[#allocation5 + $0x108] sm:$0xff]  ;;  %v1300_v26 = vcombine.low %v222_v13, %v226_v15  ;;  %p1520_p7 = pnand %p1519_p3, %p1843_p11  ;;  %s1524_s3 = scalar_lea.vmem %s1523_s28, 4096 }
  0x50   : > { %v218_v23 = vld [vmem:[#allocation5 + $0x120] sm:$0xff]  ;;  %v219_v25 = vld [vmem:[#allocation5 + $0x128] sm:$0xff]  ;;  %v1302_v27 = vcombine.low %v223_v16, %v227_v17  ;;  %p1525_p10 = scmp.lt.s32.totalorder %s1779_s18, %s1523_s28  ;;  %p1526_p2 = scmp.lt.s32.totalorder %s1524_s3, %s1518_s26 }
  0x51   : > { %v1293_v28 = vcombine.high %v214_v22, %v218_v23  ;;  %v1295_v29 = vcombine.high %v215_v24, %v219_v25  ;;  %v206_v30 = vld [vmem:[#allocation5 + $0xc0] sm:$0xff]  ;;  %v207_v32 = vld [vmem:[#allocation5 + $0xc8] sm:$0xff]  ;;  %v1292_v34 = vcombine.low %v214_v22, %v218_v23  ;;  %v1294_v35 = vcombine.low %v215_v24, %v219_v25  ;;  %p1521_p12 = pneg %p1520_p7 }
  0x52   : > { %963 = vmatpush1.bf16.msra.mxu0 %v1308_v18  ;;  %1006 = vmatpush1.bf16.msra.mxu1 %v1310_v19  ;;  %v210_v31 = vld [vmem:[#allocation5 + $0xe0] sm:$0xff]  ;;  %v211_v33 = vld [vmem:[#allocation5 + $0xe8] sm:$0xff]  ;;  %p1527_p13 = por %p1526_p2, %p1525_p10 }
  0x53   : > { %964 = vmatprep.subr.bf16.mxu0 %v1301_v20  ;;  %1007 = vmatprep.subr.bf16.mxu1 %v1303_v21  ;;  %v1285_v36 = vcombine.high %v206_v30, %v210_v31  ;;  %v1287_v37 = vcombine.high %v207_v32, %v211_v33  ;;  %v198_v38 = vld [vmem:[#allocation5 + $0x80] sm:$0xff]  ;;  %v199_v40 = vld [vmem:[#allocation5 + $0x88] sm:$0xff]  ;;  %v1284_v42 = vcombine.low %v206_v30, %v210_v31 }
  0x54   : > { %v202_v39 = vld [vmem:[#allocation5 + $0xa0] sm:$0xff]  ;;  %v203_v41 = vld [vmem:[#allocation5 + $0xa8] sm:$0xff]  ;;  %v1286_v43 = vcombine.low %v207_v32, %v211_v33  ;;  %p1528_p0 = pnand %p1527_p13, %p1521_p12 }
  0x55   : > { %v1277_v44 = vcombine.high %v198_v38, %v202_v39  ;;  %v1279_v45 = vcombine.high %v199_v40, %v203_v41  ;;  %v190_v46 = vld [vmem:[#allocation5 + $0x40] sm:$0xff]  ;;  %v191_v48 = vld [vmem:[#allocation5 + $0x48] sm:$0xff]  ;;  %v1276_v50 = vcombine.low %v198_v38, %v202_v39  ;;  %v1278_v51 = vcombine.low %v199_v40, %v203_v41 }
  0x56   : > { %965 = vmatpush1.bf16.msra.mxu0 %v1300_v26  ;;  %1008 = vmatpush1.bf16.msra.mxu1 %v1302_v27  ;;  %v194_v47 = vld [vmem:[#allocation5 + $0x60] sm:$0xff]  ;;  %v195_v49 = vld [vmem:[#allocation5 + $0x68] sm:$0xff] }
  0x57   : > { %966 = vmatprep.subr.bf16.mxu0 %v1293_v28  ;;  %1009 = vmatprep.subr.bf16.mxu1 %v1295_v29  ;;  %v1269_v52 = vcombine.high %v190_v46, %v194_v47  ;;  %v1271_v53 = vcombine.high %v191_v48, %v195_v49  ;;  %v182_v54 = vld [vmem:[#allocation5] sm:$0xff]  ;;  %v183_v57 = vld [vmem:[#allocation5 + $0x8] sm:$0xff]  ;;  %v1268_v59 = vcombine.low %v190_v46, %v194_v47 }
  0x58   : > { %v186_v55 = vld [vmem:[#allocation5 + $0x20] sm:$0xff]  ;;  %v187_v58 = vld [vmem:[#allocation5 + $0x28] sm:$0xff]  ;;  %v1270_v60 = vcombine.low %v191_v48, %v195_v49 }
  0x59   : > { %v1743_v56 = vld [vmem:[%s1732_s24 + $0x4] ss:$8 sps:$4 sm:$0xff]   ;;  %v1261_v61 = vcombine.high %v182_v54, %v186_v55  ;;  %v1263_v62 = vcombine.high %v183_v57, %v187_v58  ;;  %v1260_v3 = vcombine.low %v182_v54, %v186_v55  ;;  %v1262_v4 = vcombine.low %v183_v57, %v187_v58 }
  0x5a   : > { %967 = vmatpush1.bf16.msra.mxu0 %v1292_v34  ;;  %1010 = vmatpush1.bf16.msra.mxu1 %v1294_v35  ;;  %v302_v63 = vld [vmem:[#allocation5 + $0x3c0] sm:$0xff]  ;;  %v303_v1 = vld [vmem:[#allocation5 + $0x3c8] sm:$0xff] }
  0x5b   : > { %968 = vmatprep.subr.bf16.mxu0 %v1285_v36  ;;  %1011 = vmatprep.subr.bf16.mxu1 %v1287_v37  ;;  %v306_v0 = vld [vmem:[#allocation5 + $0x3e0] sm:$0xff]  ;;  %v307_v2 = vld [vmem:[#allocation5 + $0x3e8] sm:$0xff] }
  0x5c   : > { %992 = vmatprep.mubr.bf16.mxu0 %v1743_v56  ;;  %1035 = vmatprep.mubr.bf16.mxu1 %v1743_v56  ;;  %v1381_v5 = vcombine.high %v302_v63, %v306_v0  ;;  %v1383_v6 = vcombine.high %v303_v1, %v307_v2  ;;  %v294_v7 = vld [vmem:[#allocation5 + $0x380] sm:$0xff]  ;;  %v295_v9 = vld [vmem:[#allocation5 + $0x388] sm:$0xff]  ;;  %v1380_v11 = vcombine.low %v302_v63, %v306_v0  ;;  %v240_v0 = vld [vmem:[#allocation5 + $0x1d0] sm:$0xff] }
  0x5d   : > { %v298_v8 = vld [vmem:[#allocation5 + $0x3a0] sm:$0xff]  ;;  %v299_v10 = vld [vmem:[#allocation5 + $0x3a8] sm:$0xff]  ;;  %v1382_v12 = vcombine.low %v303_v1, %v307_v2  ;;  %v244_v1 = vld [vmem:[#allocation5 + $0x1f0] sm:$0xff] }
  0x5e   : > { %969 = vmatpush1.bf16.msra.mxu0 %v1284_v42  ;;  %1012 = vmatpush1.bf16.msra.mxu1 %v1286_v43  ;;  %v1373_v13 = vcombine.high %v294_v7, %v298_v8  ;;  %v1375_v14 = vcombine.high %v295_v9, %v299_v10  ;;  %v286_v15 = vld [vmem:[#allocation5 + $0x340] sm:$0xff]  ;;  %v287_v17 = vld [vmem:[#allocation5 + $0x348] sm:$0xff]  ;;  %v1372_v19 = vcombine.low %v294_v7, %v298_v8  ;;  %v241_v2 = vld [vmem:[#allocation5 + $0x1d8] sm:$0xff] }
  0x5f   : > { %970 = vmatprep.subr.bf16.mxu0 %v1277_v44  ;;  %1013 = vmatprep.subr.bf16.mxu1 %v1279_v45  ;;  %v290_v16 = vld [vmem:[#allocation5 + $0x360] sm:$0xff]  ;;  %v291_v18 = vld [vmem:[#allocation5 + $0x368] sm:$0xff]  ;;  %v1374_v20 = vcombine.low %v295_v9, %v299_v10  ;;  %v232_v8 = vld [vmem:[#allocation5 + $0x190] sm:$0xff] }
  0x60   : > { %v1365_v21 = vcombine.high %v286_v15, %v290_v16  ;;  %v1367_v22 = vcombine.high %v287_v17, %v291_v18  ;;  %v278_v23 = vld [vmem:[#allocation5 + $0x300] sm:$0xff]  ;;  %v279_v25 = vld [vmem:[#allocation5 + $0x308] sm:$0xff]  ;;  %v1364_v27 = vcombine.low %v286_v15, %v290_v16  ;;  %v1366_v28 = vcombine.low %v287_v17, %v291_v18  ;;  %v236_v9 = vld [vmem:[#allocation5 + $0x1b0] sm:$0xff] }
  0x61   : > { %v282_v24 = vld [vmem:[#allocation5 + $0x320] sm:$0xff]  ;;  %v283_v26 = vld [vmem:[#allocation5 + $0x328] sm:$0xff]  ;;  %v1313_v15 = vcombine.high %v232_v8, %v236_v9  ;;  %v224_v17 = vld [vmem:[#allocation5 + $0x150] sm:$0xff] }
  0x62   : > { %971 = vmatpush1.bf16.msra.mxu0 %v1276_v50  ;;  %1014 = vmatpush1.bf16.msra.mxu1 %v1278_v51  ;;  %v1357_v29 = vcombine.high %v278_v23, %v282_v24  ;;  %v1359_v30 = vcombine.high %v279_v25, %v283_v26  ;;  %v270_v31 = vld [vmem:[#allocation5 + $0x2c0] sm:$0xff]  ;;  %v271_v33 = vld [vmem:[#allocation5 + $0x2c8] sm:$0xff]  ;;  %v1356_v35 = vcombine.low %v278_v23, %v282_v24  ;;  %v228_v18 = vld [vmem:[#allocation5 + $0x170] sm:$0xff] }
  0x63   : > { %972 = vmatprep.subr.bf16.mxu0 %v1269_v52  ;;  %1015 = vmatprep.subr.bf16.mxu1 %v1271_v53  ;;  %v274_v32 = vld [vmem:[#allocation5 + $0x2e0] sm:$0xff]  ;;  %v275_v34 = vld [vmem:[#allocation5 + $0x2e8] sm:$0xff]  ;;  %v1358_v36 = vcombine.low %v279_v25, %v283_v26  ;;  %v1305_v23 = vcombine.high %v224_v17, %v228_v18  ;;  %v216_v25 = vld [vmem:[#allocation5 + $0x110] sm:$0xff] }
  0x64   : > { %v1349_v37 = vcombine.high %v270_v31, %v274_v32  ;;  %v1351_v38 = vcombine.high %v271_v33, %v275_v34  ;;  %v262_v39 = vld [vmem:[#allocation5 + $0x280] sm:$0xff]  ;;  %v263_v41 = vld [vmem:[#allocation5 + $0x288] sm:$0xff]  ;;  %v1348_v43 = vcombine.low %v270_v31, %v274_v32  ;;  %v1350_v44 = vcombine.low %v271_v33, %v275_v34  ;;  %v220_v26 = vld [vmem:[#allocation5 + $0x130] sm:$0xff] }
  0x65   : > { %v266_v40 = vld [vmem:[#allocation5 + $0x2a0] sm:$0xff]  ;;  %v267_v42 = vld [vmem:[#allocation5 + $0x2a8] sm:$0xff]  ;;  %v1297_v31 = vcombine.high %v216_v25, %v220_v26  ;;  %v208_v33 = vld [vmem:[#allocation5 + $0xd0] sm:$0xff] }
  0x66   : > { %973 = vmatpush1.bf16.msra.mxu0 %v1268_v59  ;;  %1016 = vmatpush1.bf16.msra.mxu1 %v1270_v60  ;;  %v1341_v45 = vcombine.high %v262_v39, %v266_v40  ;;  %v1343_v46 = vcombine.high %v263_v41, %v267_v42  ;;  %v254_v47 = vld [vmem:[#allocation5 + $0x240] sm:$0xff]  ;;  %v255_v49 = vld [vmem:[#allocation5 + $0x248] sm:$0xff]  ;;  %v1340_v51 = vcombine.low %v262_v39, %v266_v40  ;;  %v212_v34 = vld [vmem:[#allocation5 + $0xf0] sm:$0xff] }
  0x67   : > { %974 = vmatprep.subr.bf16.mxu0 %v1261_v61  ;;  %1017 = vmatprep.subr.bf16.mxu1 %v1263_v62  ;;  %v258_v48 = vld [vmem:[#allocation5 + $0x260] sm:$0xff]  ;;  %v259_v50 = vld [vmem:[#allocation5 + $0x268] sm:$0xff]  ;;  %v1342_v52 = vcombine.low %v263_v41, %v267_v42  ;;  %v1289_v39 = vcombine.high %v208_v33, %v212_v34  ;;  %v200_v40 = vld [vmem:[#allocation5 + $0x90] sm:$0xff] }
  0x68   : > { %v1333_v53 = vcombine.high %v254_v47, %v258_v48  ;;  %v1335_v54 = vcombine.high %v255_v49, %v259_v50  ;;  %v246_v55 = vld [vmem:[#allocation5 + $0x200] sm:$0xff]  ;;  %v247_v58 = vld [vmem:[#allocation5 + $0x208] sm:$0xff]  ;;  %v1332_v60 = vcombine.low %v254_v47, %v258_v48  ;;  %v1334_v61 = vcombine.low %v255_v49, %v259_v50  ;;  %v204_v41 = vld [vmem:[#allocation5 + $0xb0] sm:$0xff] }
  0x69   : > { %v250_v57 = vld [vmem:[#allocation5 + $0x220] sm:$0xff]  ;;  %v251_v59 = vld [vmem:[#allocation5 + $0x228] sm:$0xff]  ;;  %v201_v42 = vld [vmem:[#allocation5 + $0x98] sm:$0xff] }
  0x6a   : > { %975 = vmatpush1.bf16.msra.mxu0 %v1260_v3  ;;  %1018 = vmatpush1.bf16.msra.mxu1 %v1262_v4  ;;  %v1325_v62 = vcombine.high %v246_v55, %v250_v57  ;;  %v1327_v63 = vcombine.high %v247_v58, %v251_v59  ;;  %v245_v3 = vld [vmem:[#allocation5 + $0x1f8] sm:$0xff]  ;;  %v1324_v4 = vcombine.low %v246_v55, %v250_v57  ;;  %v192_v48 = vld [vmem:[#allocation5 + $0x50] sm:$0xff] }
  0x6b   : > { %976 = vmatprep.subr.bf16.mxu0 %v1381_v5  ;;  %1019 = vmatprep.subr.bf16.mxu1 %v1383_v6  ;;  %v1326_v5 = vcombine.low %v247_v58, %v251_v59  ;;  %v1321_v6 = vcombine.high %v240_v0, %v244_v1  ;;  %v1323_v7 = vcombine.high %v241_v2, %v245_v3  ;;  %v1748_v10 = vld [vmem:[%s1732_s24] ss:$8 sps:$4 sm:$0xff]  }
  0x6c   : > { %v196_v49 = vld [vmem:[#allocation5 + $0x70] sm:$0xff]  ;;  %v193_v50 = vld [vmem:[#allocation5 + $0x58] sm:$0xff] }
  0x6d   : > { %v184_v57 = vld [vmem:[#allocation5 + $0x10] sm:$0xff]  ;;  %v185_v59 = vld [vmem:[#allocation5 + $0x18] sm:$0xff] }
  0x6e   : > { %977 = vmatpush2.bf16.msra.mxu0 %v1380_v11  ;;  %1020 = vmatpush2.bf16.msra.mxu1 %v1382_v12  ;;  %v233_v11 = vld [vmem:[#allocation5 + $0x198] sm:$0xff]  ;;  %v188_v58 = vld [vmem:[#allocation5 + $0x30] sm:$0xff] }
  0x6f   : > { %978 = vmatprep.subr.bf16.mxu0 %v1373_v13  ;;  %1021 = vmatprep.subr.bf16.mxu1 %v1375_v14  ;;  %v237_v12 = vld [vmem:[#allocation5 + $0x1b8] sm:$0xff]  ;;  %v1320_v13 = vcombine.low %v240_v0, %v244_v1  ;;  %v1322_v14 = vcombine.low %v241_v2, %v245_v3  ;;  %v304_v1 = vld [vmem:[#allocation5 + $0x3d0] sm:$0xff] }
  0x70   : > { %v1315_v16 = vcombine.high %v233_v11, %v237_v12  ;;  %v308_v2 = vld [vmem:[#allocation5 + $0x3f0] sm:$0xff]  ;;  %v305_v3 = vld [vmem:[#allocation5 + $0x3d8] sm:$0xff] }
  0x72   : > { %979 = vmatpush2.bf16.msra.mxu0 %v1372_v19  ;;  %1022 = vmatpush2.bf16.msra.mxu1 %v1374_v20  ;;  %v225_v19 = vld [vmem:[#allocation5 + $0x158] sm:$0xff] }
  0x73   : > { %980 = vmatprep.subr.bf16.mxu0 %v1365_v21  ;;  %1023 = vmatprep.subr.bf16.mxu1 %v1367_v22  ;;  %v229_v20 = vld [vmem:[#allocation5 + $0x178] sm:$0xff]  ;;  %v1312_v21 = vcombine.low %v232_v8, %v236_v9  ;;  %v1314_v22 = vcombine.low %v233_v11, %v237_v12  ;;  %v296_v9 = vld [vmem:[#allocation5 + $0x390] sm:$0xff] }
  0x74   : > { %v1307_v24 = vcombine.high %v225_v19, %v229_v20  ;;  %v300_v11 = vld [vmem:[#allocation5 + $0x3b0] sm:$0xff]  ;;  %v297_v12 = vld [vmem:[#allocation5 + $0x398] sm:$0xff] }
  0x76   : > { %981 = vmatpush2.bf16.msra.mxu0 %v1364_v27  ;;  %1024 = vmatpush2.bf16.msra.mxu1 %v1366_v28  ;;  %v217_v27 = vld [vmem:[#allocation5 + $0x118] sm:$0xff] }
  0x77   : > { %982 = vmatprep.subr.bf16.mxu0 %v1357_v29  ;;  %1025 = vmatprep.subr.bf16.mxu1 %v1359_v30  ;;  %v221_v28 = vld [vmem:[#allocation5 + $0x138] sm:$0xff]  ;;  %v1304_v29 = vcombine.low %v224_v17, %v228_v18  ;;  %v1306_v30 = vcombine.low %v225_v19, %v229_v20  ;;  %v288_v18 = vld [vmem:[#allocation5 + $0x350] sm:$0xff] }
  0x78   : > { %v1299_v32 = vcombine.high %v217_v27, %v221_v28  ;;  %v292_v19 = vld [vmem:[#allocation5 + $0x370] sm:$0xff]  ;;  %v289_v20 = vld [vmem:[#allocation5 + $0x358] sm:$0xff] }
  0x7a   : > { %983 = vmatpush2.bf16.msra.mxu0 %v1356_v35  ;;  %1026 = vmatpush2.bf16.msra.mxu1 %v1358_v36  ;;  %v209_v35 = vld [vmem:[#allocation5 + $0xd8] sm:$0xff] }
  0x7b   : > { %984 = vmatprep.subr.bf16.mxu0 %v1349_v37  ;;  %1027 = vmatprep.subr.bf16.mxu1 %v1351_v38  ;;  %v213_v36 = vld [vmem:[#allocation5 + $0xf8] sm:$0xff]  ;;  %v1296_v37 = vcombine.low %v216_v25, %v220_v26  ;;  %v1298_v38 = vcombine.low %v217_v27, %v221_v28  ;;  %v280_v26 = vld [vmem:[#allocation5 + $0x310] sm:$0xff] }
  0x7c   : > { %v284_v27 = vld [vmem:[#allocation5 + $0x330] sm:$0xff]  ;;  %v281_v28 = vld [vmem:[#allocation5 + $0x318] sm:$0xff] }
  0x7e   : > { %985 = vmatpush2.bf16.msra.mxu0 %v1348_v43  ;;  %1028 = vmatpush2.bf16.msra.mxu1 %v1350_v44  ;;  %v205_v43 = vld [vmem:[#allocation5 + $0xb8] sm:$0xff]  ;;  %v1288_v44 = vcombine.low %v208_v33, %v212_v34  ;;  %v272_v34 = vld [vmem:[#allocation5 + $0x2d0] sm:$0xff] }
  0x7f   : > { %986 = vmatprep.subr.bf16.mxu0 %v1341_v45  ;;  %1029 = vmatprep.subr.bf16.mxu1 %v1343_v46  ;;  %v1290_v45 = vcombine.low %v209_v35, %v213_v36  ;;  %v1281_v46 = vcombine.high %v200_v40, %v204_v41  ;;  %v1283_v47 = vcombine.high %v201_v42, %v205_v43 }
  0x82   : > { %987 = vmatpush2.bf16.msra.mxu0 %v1340_v51  ;;  %1030 = vmatpush2.bf16.msra.mxu1 %v1342_v52  ;;  %v197_v51 = vld [vmem:[#allocation5 + $0x78] sm:$0xff]  ;;  %v1280_v52 = vcombine.low %v200_v40, %v204_v41  ;;  %v264_v41 = vld [vmem:[#allocation5 + $0x290] sm:$0xff] }
  0x83   : > { %988 = vmatprep.subr.bf16.mxu0 %v1333_v53  ;;  %1031 = vmatprep.subr.bf16.mxu1 %v1335_v54  ;;  %v1282_v53 = vcombine.low %v201_v42, %v205_v43  ;;  %v1273_v54 = vcombine.high %v192_v48, %v196_v49  ;;  %v1275_v55 = vcombine.high %v193_v50, %v197_v51  ;;  %v268_v42 = vld [vmem:[#allocation5 + $0x2b0] sm:$0xff]  ;;  %v265_v43 = vld [vmem:[#allocation5 + $0x298] sm:$0xff] }
  0x86   : > { %989 = vmatpush2.bf16.msra.mxu0 %v1332_v60  ;;  %1032 = vmatpush2.bf16.msra.mxu1 %v1334_v61  ;;  %v189_v60 = vld [vmem:[#allocation5 + $0x38] sm:$0xff]  ;;  %v1272_v61 = vcombine.low %v192_v48, %v196_v49  ;;  %v256_v49 = vld [vmem:[#allocation5 + $0x250] sm:$0xff] }
  0x87   : > { %990 = vmatprep.subr.bf16.mxu0 %v1325_v62  ;;  %1033 = vmatprep.subr.bf16.mxu1 %v1327_v63  ;;  %v1274_v62 = vcombine.low %v193_v50, %v197_v51  ;;  %v1265_v63 = vcombine.high %v184_v57, %v188_v58  ;;  %v1267_v0 = vcombine.high %v185_v59, %v189_v60  ;;  %v260_v50 = vld [vmem:[#allocation5 + $0x270] sm:$0xff]  ;;  %v257_v51 = vld [vmem:[#allocation5 + $0x258] sm:$0xff] }
  0x8a   : > { %991 = vmatpush2.bf16.msra.mxu0 %v1324_v4  ;;  %1034 = vmatpush2.bf16.msra.mxu1 %v1326_v5  ;;  %v309_v4 = vld [vmem:[#allocation5 + $0x3f8] sm:$0xff]  ;;  %v1264_v5 = vcombine.low %v184_v57, %v188_v58  ;;  %v248_v58 = vld [vmem:[#allocation5 + $0x210] sm:$0xff] }
  0x8b   : > { %1046 = vmatprep.subr.bf16.mxu0 %v1321_v6  ;;  %1089 = vmatprep.subr.bf16.mxu1 %v1323_v7  ;;  %v1266_v6 = vcombine.low %v185_v59, %v189_v60  ;;  %v1385_v7 = vcombine.high %v304_v1, %v308_v2  ;;  %v1387_v8 = vcombine.high %v305_v3, %v309_v4  ;;  %v252_v59 = vld [vmem:[#allocation5 + $0x230] sm:$0xff]  ;;  %v249_v60 = vld [vmem:[#allocation5 + $0x218] sm:$0xff] }
  0x8d   : > { %993 = vmatmul.mubr.bf16.vlgmr.msra.gmra.mxu0 %v1748_v10  ;;  %1036 = vmatmul.mubr.bf16.vlgmr.msra.gmra.mxu1 %v1748_v10 }
  0x8e   : > { %1047 = vmatpush1.bf16.msra.mxu0 %v1320_v13  ;;  %1090 = vmatpush1.bf16.msra.mxu1 %v1322_v14  ;;  %v301_v13 = vld [vmem:[#allocation5 + $0x3b8] sm:$0xff]  ;;  %v1384_v14 = vcombine.low %v304_v1, %v308_v2  ;;  %v1328_v2 = vcombine.low %v248_v58, %v252_v59 }
  0x8f   : > { %1048 = vmatprep.subr.bf16.mxu0 %v1313_v15  ;;  %1091 = vmatprep.subr.bf16.mxu1 %v1315_v16  ;;  %v1386_v15 = vcombine.low %v305_v3, %v309_v4  ;;  %v1377_v16 = vcombine.high %v296_v9, %v300_v11  ;;  %v1379_v17 = vcombine.high %v297_v12, %v301_v13 }
  0x90   : > { %1078 = vmatprep.mubr.bf16.mxu0 %v1743_v56  ;;  %1121 = vmatprep.mubr.bf16.mxu1 %v1743_v56  ;;  %v1291_v56 = vcombine.high %v209_v35, %v213_v36  ;;  %v276_v35 = vld [vmem:[#allocation5 + $0x2f0] sm:$0xff]  ;;  %v273_v36 = vld [vmem:[#allocation5 + $0x2d8] sm:$0xff] }
  0x92   : > { %1049 = vmatpush1.bf16.msra.mxu0 %v1312_v21  ;;  %1092 = vmatpush1.bf16.msra.mxu1 %v1314_v22  ;;  %v293_v21 = vld [vmem:[#allocation5 + $0x378] sm:$0xff]  ;;  %v1376_v22 = vcombine.low %v296_v9, %v300_v11 }
  0x93   : > { %1050 = vmatprep.subr.bf16.mxu0 %v1305_v23  ;;  %1093 = vmatprep.subr.bf16.mxu1 %v1307_v24  ;;  %v1378_v23 = vcombine.low %v297_v12, %v301_v13  ;;  %v1369_v24 = vcombine.high %v288_v18, %v292_v19  ;;  %v1371_v25 = vcombine.high %v289_v20, %v293_v21 }
  0x96   : > { %1051 = vmatpush1.bf16.msra.mxu0 %v1304_v29  ;;  %1094 = vmatpush1.bf16.msra.mxu1 %v1306_v30  ;;  %v285_v29 = vld [vmem:[#allocation5 + $0x338] sm:$0xff]  ;;  %v1368_v30 = vcombine.low %v288_v18, %v292_v19 }
  0x97   : > { %1052 = vmatprep.subr.bf16.mxu0 %v1297_v31  ;;  %1095 = vmatprep.subr.bf16.mxu1 %v1299_v32  ;;  %v1370_v31 = vcombine.low %v289_v20, %v293_v21  ;;  %v1361_v32 = vcombine.high %v280_v26, %v284_v27  ;;  %v1363_v33 = vcombine.high %v281_v28, %v285_v29 }
  0x9a   : > { %1053 = vmatpush1.bf16.msra.mxu0 %v1296_v37  ;;  %1096 = vmatpush1.bf16.msra.mxu1 %v1298_v38  ;;  %v277_v37 = vld [vmem:[#allocation5 + $0x2f8] sm:$0xff]  ;;  %v1360_v38 = vcombine.low %v280_v26, %v284_v27 }
  0x9b   : > { %1054 = vmatprep.subr.bf16.mxu0 %v1289_v39  ;;  %1097 = vmatprep.subr.bf16.mxu1 %v1291_v56  ;;  %v1362_v39 = vcombine.low %v281_v28, %v285_v29  ;;  %v1353_v56 = vcombine.high %v272_v34, %v276_v35  ;;  %v1355_v40 = vcombine.high %v273_v36, %v277_v37 }
  0x9e   : > { %1055 = vmatpush1.bf16.msra.mxu0 %v1288_v44  ;;  %1098 = vmatpush1.bf16.msra.mxu1 %v1290_v45  ;;  %v269_v44 = vld [vmem:[#allocation5 + $0x2b8] sm:$0xff]  ;;  %v1352_v45 = vcombine.low %v272_v34, %v276_v35 }
  0x9f   : > { %1056 = vmatprep.subr.bf16.mxu0 %v1281_v46  ;;  %1099 = vmatprep.subr.bf16.mxu1 %v1283_v47  ;;  %v1354_v46 = vcombine.low %v273_v36, %v277_v37  ;;  %v1345_v47 = vcombine.high %v264_v41, %v268_v42  ;;  %v1347_v48 = vcombine.high %v265_v43, %v269_v44 }
  0xa2   : > { %1057 = vmatpush1.bf16.msra.mxu0 %v1280_v52  ;;  %1100 = vmatpush1.bf16.msra.mxu1 %v1282_v53  ;;  %v261_v52 = vld [vmem:[#allocation5 + $0x278] sm:$0xff]  ;;  %v1344_v53 = vcombine.low %v264_v41, %v268_v42 }
  0xa3   : > { %1058 = vmatprep.subr.bf16.mxu0 %v1273_v54  ;;  %1101 = vmatprep.subr.bf16.mxu1 %v1275_v55  ;;  %v1346_v54 = vcombine.low %v265_v43, %v269_v44  ;;  %v1337_v55 = vcombine.high %v256_v49, %v260_v50  ;;  %v1339_v57 = vcombine.high %v257_v51, %v261_v52 }
  0xa6   : > { %1059 = vmatpush1.bf16.msra.mxu0 %v1272_v61  ;;  %1102 = vmatpush1.bf16.msra.mxu1 %v1274_v62  ;;  %v253_v61 = vld [vmem:[#allocation5 + $0x238] sm:$0xff]  ;;  %v1336_v62 = vcombine.low %v256_v49, %v260_v50 }
  0xa7   : > { %1060 = vmatprep.subr.bf16.mxu0 %v1265_v63  ;;  %1103 = vmatprep.subr.bf16.mxu1 %v1267_v0  ;;  %v1338_v63 = vcombine.low %v257_v51, %v261_v52  ;;  %v1329_v0 = vcombine.high %v248_v58, %v252_v59  ;;  %v1331_v1 = vcombine.high %v249_v60, %v253_v61 }
  0xa8   : > { %v1330_v3 = vcombine.low %v249_v60, %v253_v61 }
  0xaa   : > { %1061 = vmatpush1.bf16.msra.mxu0 %v1264_v5  ;;  %1104 = vmatpush1.bf16.msra.mxu1 %v1266_v6 }
  0xab   : > { %1062 = vmatprep.subr.bf16.mxu0 %v1385_v7  ;;  %1105 = vmatprep.subr.bf16.mxu1 %v1387_v8 }
  0xae   : > { %1063 = vmatpush2.bf16.msra.mxu0 %v1384_v14  ;;  %1106 = vmatpush2.bf16.msra.mxu1 %v1386_v15 }
  0xaf   : > { %1064 = vmatprep.subr.bf16.mxu0 %v1377_v16  ;;  %1107 = vmatprep.subr.bf16.mxu1 %v1379_v17 }
  0xb2   : > { %1065 = vmatpush2.bf16.msra.mxu0 %v1376_v22  ;;  %1108 = vmatpush2.bf16.msra.mxu1 %v1378_v23 }
  0xb3   : > { %1066 = vmatprep.subr.bf16.mxu0 %v1369_v24  ;;  %1109 = vmatprep.subr.bf16.mxu1 %v1371_v25 }
  0xb6   : > { %1067 = vmatpush2.bf16.msra.mxu0 %v1368_v30  ;;  %1110 = vmatpush2.bf16.msra.mxu1 %v1370_v31 }
  0xb7   : > { %1068 = vmatprep.subr.bf16.mxu0 %v1361_v32  ;;  %1111 = vmatprep.subr.bf16.mxu1 %v1363_v33 }
  0xba   : > { %1069 = vmatpush2.bf16.msra.mxu0 %v1360_v38  ;;  %1112 = vmatpush2.bf16.msra.mxu1 %v1362_v39 }
  0xbb   : > { %1070 = vmatprep.subr.bf16.mxu0 %v1353_v56  ;;  %1113 = vmatprep.subr.bf16.mxu1 %v1355_v40 }
  0xbe   : > { %1071 = vmatpush2.bf16.msra.mxu0 %v1352_v45  ;;  %1114 = vmatpush2.bf16.msra.mxu1 %v1354_v46 }
  0xbf   : > { %1072 = vmatprep.subr.bf16.mxu0 %v1345_v47  ;;  %1115 = vmatprep.subr.bf16.mxu1 %v1347_v48 }
  0xc2   : > { %1073 = vmatpush2.bf16.msra.mxu0 %v1344_v53  ;;  %1116 = vmatpush2.bf16.msra.mxu1 %v1346_v54 }
  0xc3   : > { %1074 = vmatprep.subr.bf16.mxu0 %v1337_v55  ;;  %1117 = vmatprep.subr.bf16.mxu1 %v1339_v57 }
  0xc6   : > { %1075 = vmatpush2.bf16.msra.mxu0 %v1336_v62  ;;  %1118 = vmatpush2.bf16.msra.mxu1 %v1338_v63 }
  0xc7   : > { %1076 = vmatprep.subr.bf16.mxu0 %v1329_v0  ;;  %1119 = vmatprep.subr.bf16.mxu1 %v1331_v1 }
  0xca   : > { %1077 = vmatpush2.bf16.msra.mxu0 %v1328_v2  ;;  %1120 = vmatpush2.bf16.msra.mxu1 %v1330_v3 }
  0xcd   : > { %1079 = vmatmul.mubr.bf16.vlgmr.msra.gmra.mxu0 %v1748_v10  ;;  %1122 = vmatmul.mubr.bf16.vlgmr.msra.gmra.mxu1 %v1748_v10 }
 0x14d   : > { %v994_v4 = vpop.f32.mrf.mxu0  ;;  %v1037_v5 = vpop.f32.mrf.mxu1 }
 0x14e   : > { %1132 = vst [vmem:[%s1757_s17] sm:$0xff] %v994_v4  ;;  %1134 = vst [vmem:[%s1757_s17 + $0x10] sm:$0xff] %v1037_v5 }
 0x14f   : > { %v996_v6 = vpop.f32.mrf.mxu0  ;;  %v1039_v10 = vpop.f32.mrf.mxu1 }
 0x150   : > { %1133 = vst [vmem:[%s1757_s17 + $0x8] sm:$0xff] %v996_v6  ;;  %1135 = vst [vmem:[%s1757_s17 + $0x18] sm:$0xff] %v1039_v10 }
 0x151   : > { %v998_v7 = vpop.f32.mrf.mxu0  ;;  %v1041_v8 = vpop.f32.mrf.mxu1 }
 0x152   : > { %1140 = vst [vmem:[%s1757_s17 + $0x40] sm:$0xff] %v998_v7  ;;  %1142 = vst [vmem:[%s1757_s17 + $0x50] sm:$0xff] %v1041_v8 }
 0x153   : > { %v1000_v9 = vpop.f32.mrf.mxu0  ;;  %v1043_v11 = vpop.f32.mrf.mxu1 }
 0x154   : > { %1141 = vst [vmem:[%s1757_s17 + $0x48] sm:$0xff] %v1000_v9  ;;  %1143 = vst [vmem:[%s1757_s17 + $0x58] sm:$0xff] %v1043_v11 }
 0x18d   : > { %v1080_v12 = vpop.f32.mrf.mxu0  ;;  %v1123_v13 = vpop.f32.mrf.mxu1 }
 0x18e   : > { %1136 = vst [vmem:[%s1757_s17 + $0x20] sm:$0xff] %v1080_v12  ;;  %1138 = vst [vmem:[%s1757_s17 + $0x30] sm:$0xff] %v1123_v13 }
 0x18f   : > { %v1082_v14 = vpop.f32.mrf.mxu0  ;;  %v1125_v15 = vpop.f32.mrf.mxu1 }
 0x190   : > { %1137 = vst [vmem:[%s1757_s17 + $0x28] sm:$0xff] %v1082_v14  ;;  %1139 = vst [vmem:[%s1757_s17 + $0x38] sm:$0xff] %v1125_v15 }
 0x191   : > { %v1084_v16 = vpop.f32.mrf.mxu0  ;;  %v1127_v17 = vpop.f32.mrf.mxu1 }
 0x192   : > { %1144 = vst [vmem:[%s1757_s17 + $0x60] sm:$0xff] %v1084_v16  ;;  %1146 = vst [vmem:[%s1757_s17 + $0x70] sm:$0xff] %v1127_v17 }
 0x193   : > { %v1086_v18 = vpop.f32.mrf.mxu0  ;;  %v1129_v19 = vpop.f32.mrf.mxu1 }
 0x194   : > { %1145 = vst [vmem:[%s1757_s17 + $0x68] sm:$0xff] %v1086_v18  ;;  %1147 = vst [vmem:[%s1757_s17 + $0x78] sm:$0xff] %v1129_v19 }
 0x195   : > { %1531 = shalt.err (!%p1528_p0)
}
 0x196   : > { %s1532_s4 = scalar_lea.hbm %s1777_s25, 2048  ;;  %s1536_s7 = scalar_lea.hbm %s1827_s2, 4096 }
 0x197   : > { %p1533_p5 = scmp.ne.s32.totalorder %s1777_s25, %s1532_s4  ;;  %p1537_p4 = scmp.lt.s32.totalorder %s1777_s25, %s1827_s2 }
 0x198   : > { %p1538_p6 = scmp.lt.s32.totalorder %s1536_s7, %s1532_s4 }
 0x199   : > { %p1534_p9 = pnand %p1533_p5, %p1843_p11 }
 0x19a   : > { %p1539_p8 = por %p1538_p6, %p1537_p4 }
 0x19b   : > { %p1535_p1 = pneg %p1534_p9 }
 0x19d   : > { %p1540_p3 = pnand %p1539_p8, %p1535_p1 }
 0x19f   : > { %1543 = shalt.err (!%p1540_p3)
}
 0x1a0   : > { %s1595_s24 = smov 1024   ;;  %s1596_s15 = smov 64  }
 0x1a1   : > { %1404 = dma.vmem_to_hbm [thread:$0]  (%p1843_p11), %s1779_s18, 2048, %s1777_s25, %s1149_s13, %s1595_s24, %s1595_s24, %s1596_s15  }
 0x1a2 PF: > { %s1178_s17 = sand.u32 1, %s1574_s9   ;;  %p1844_p7 = scmp.ne.s32.totalorder %s1833_s16, 0 }
 0x1a3   : > { %p1845_p12 = scmp.ge.s32.totalorder %s1586_s12, 2  ;;  %s1179_s8 = scalar_lea.sflag [#allocation4], %s1178_s17 }
 0x1a5   : > { %p1415_p10 = pnand %p1845_p12, %p1844_p7 }
 0x1a7   : > { %p1416_p2 = pneg %p1415_p10 }
 0x1a9   : > { %1569 = dma.done.wait (%p1416_p2), %s1179_s8, 2048  }
 0x1aa   : > { %1571 = vsyncadd (%p1416_p2), %s1179_s8, 4294965248  ;;  %p16_p13 = scmp.ge.s32.totalorder %s1666_s21, 4   ;;  %s1846_s9 = smov %s1578_s10 }
 0x1ab   : > { %s1847_s10 = smov %s1582_s11  ;;  %s1848_s11 = smov %s1683_s29 }
 0x1ac   : > { %s1849_s12 = smov %s1666_s21  ;;  %18 = sbr.rel (!%p16_p13) target bundleno = 6 (0x6), region = 77 }
 0x1b1   :  { %1184 = vsyncpa [#allocation3], 1 }
 0x1b2   :  { %1186 = vsyncpa [#allocation3 + $0x1], 1 }
 0x1b3   :  { %1187 = vsyncpa [#allocation6], 1 }
 0x1b4   :  { %1188 = vsyncpa [#allocation4], 1 }
 0x1b5   :  { %1190 = vsyncpa [#allocation4 + $0x1], 1 }

</bundles_post_ra>
